<compile_context>
chip_gen: v5e
topology: v5e:2x2
jax: 0.10.0
libtpu: 0.0.40
codegen_flags: <defaults>
</compile_context>

<pallas_src>
import jax
import jax.numpy as jnp
from jax.experimental import pallas as pl
from jax.experimental.pallas import tpu as pltpu


def linear_kernel(xt_ref, w_ref, b_ref, ot_ref):
    # xt_ref: (in_f, bn)  VMEM  -- x^T tile, batch on the lane axis
    # w_ref : (out_f, in_f) SMEM -- PyTorch nn.Linear layout, scalar reads
    # b_ref : (out_f,)     SMEM
    # ot_ref: (out_f, bn)  VMEM  -- out^T tile, lane-dense stores
    out_f, in_f = w_ref.shape
    xt = xt_ref[...]                                  # (in_f, bn) in vregs
    for j in range(out_f):                            # unrolled: 2 output rows
        acc = xt[0:1, :] * w_ref[j, 0]
        for k in range(1, in_f):                      # unrolled: 5 MACs / row
            acc = acc + xt[k:k + 1, :] * w_ref[j, k]
        ot_ref[j:j + 1, :] = acc + b_ref[j]


def _pick_block_n(n):
    # Single block while it trivially fits; otherwise lane-aligned tiles that
    # stay far below the scoped-VMEM default (and v7x's 64 MiB physical VMEM).
    if n <= 1024:
        return n                      # block == full dim satisfies tiling rule
    for bn in (1024, 512, 256, 128):
        if n % bn == 0:
            return bn
    return n                          # TODO(synk): pad ragged N to a lane tile


def linear_forward(x, weight, bias):
    n, in_f = x.shape
    out_f = weight.shape[0]
    xt = jnp.transpose(x)             # (in_f, n): wrapper-side layout plumbing
    bn = _pick_block_n(n)
    grid = (pl.cdiv(n, bn),)
    out_t = pl.pallas_call(
        linear_kernel,
        out_shape=jax.ShapeDtypeStruct((out_f, n), jnp.float32),
        grid=grid,
        in_specs=[
            pl.BlockSpec((in_f, bn), lambda i: (0, i)),
            pl.BlockSpec(memory_space=pltpu.MemorySpace.SMEM),   # weight
            pl.BlockSpec(memory_space=pltpu.MemorySpace.SMEM),   # bias
        ],
        out_specs=pl.BlockSpec((out_f, bn), lambda i: (0, i)),
        compiler_params=pltpu.CompilerParams(
            dimension_semantics=("parallel",)),
        cost_estimate=pl.CostEstimate(
            flops=2 * n * in_f * out_f,
            transcendentals=0,
            bytes_accessed=4 * (n * in_f + out_f * in_f + out_f + n * out_f)),
    )(xt, weight, bias)
    return jnp.transpose(out_t)       # back to (n, out_f)


if __name__ == "__main__":
    key = jax.random.PRNGKey(0)
    kx, kw, kb = jax.random.split(key, 3)

    in_features, out_features = 5, 2
    batch = 8

    # Deterministic parameter init mimicking PyTorch nn.Linear default:
    # uniform(-1/sqrt(in_features), 1/sqrt(in_features))
    bound = 1.0 / (in_features ** 0.5)
    weight = jax.random.uniform(
        kw, (out_features, in_features), jnp.float32, -bound, bound
    )
    bias = jax.random.uniform(kb, (out_features,), jnp.float32, -bound, bound)

    x = jax.random.normal(kx, (batch, in_features), jnp.float32)

    out = linear_forward(x, weight, bias)
    out = jax.block_until_ready(out)

    # Reference check against plain JAX
    ref = x @ weight.T + bias
    assert out.shape == (batch, out_features)
    assert jnp.allclose(out, ref, atol=1e-5, rtol=1e-5)

    print("KERNEL_OK")
</pallas_src>

<mosaic_0001>
module attributes {stable_mosaic.version = 11 : i64} {
  func.func @linear_kernel(%arg0: i32, %arg1: memref<5x8xf32, #tpu.memory_space<vmem>>, %arg2: memref<2x5xf32, #tpu.memory_space<smem>>, %arg3: memref<2xf32, #tpu.memory_space<smem>>, %arg4: memref<2x8xf32, #tpu.memory_space<vmem>>) attributes {dimension_semantics = [#tpu.dimension_semantics<parallel>], iteration_bounds = array<i64: 1>, scalar_prefetch = 0 : i64, scratch_operands = 0 : i64, tpu.core_type = #tpu.core_type<tc>, window_params = [{transform_indices = @transform_0, window_bounds = array<i64: 5, 8>}, {transform_indices = @transform_1, window_bounds = array<i64: 2, 5>}, {transform_indices = @transform_2, window_bounds = array<i64: 2>}, {transform_indices = @transform_3, window_bounds = array<i64: 2, 8>}]} {
    %c0 = arith.constant 0 : index
    %c0_0 = arith.constant 0 : index
    %0 = vector.load %arg1[%c0, %c0_0] : memref<5x8xf32, #tpu.memory_space<vmem>>, vector<5x8xf32>
    %1 = vector.extract_strided_slice %0 {offsets = [0, 0], sizes = [1, 8], strides = [1, 1]} : vector<5x8xf32> to vector<1x8xf32>
    %c0_1 = arith.constant 0 : index
    %c0_2 = arith.constant 0 : index
    %2 = memref.load %arg2[%c0_1, %c0_2] : memref<2x5xf32, #tpu.memory_space<smem>>
    %3 = vector.broadcast %2 : f32 to vector<1x8xf32>
    %4 = arith.mulf %1, %3 : vector<1x8xf32>
    %5 = vector.extract_strided_slice %0 {offsets = [1, 0], sizes = [1, 8], strides = [1, 1]} : vector<5x8xf32> to vector<1x8xf32>
    %c0_3 = arith.constant 0 : index
    %c1 = arith.constant 1 : index
    %6 = memref.load %arg2[%c0_3, %c1] : memref<2x5xf32, #tpu.memory_space<smem>>
    %7 = vector.broadcast %6 : f32 to vector<1x8xf32>
    %8 = arith.mulf %5, %7 : vector<1x8xf32>
    %9 = arith.addf %4, %8 : vector<1x8xf32>
    %10 = vector.extract_strided_slice %0 {offsets = [2, 0], sizes = [1, 8], strides = [1, 1]} : vector<5x8xf32> to vector<1x8xf32>
    %c0_4 = arith.constant 0 : index
    %c2 = arith.constant 2 : index
    %11 = memref.load %arg2[%c0_4, %c2] : memref<2x5xf32, #tpu.memory_space<smem>>
    %12 = vector.broadcast %11 : f32 to vector<1x8xf32>
    %13 = arith.mulf %10, %12 : vector<1x8xf32>
    %14 = arith.addf %9, %13 : vector<1x8xf32>
    %15 = vector.extract_strided_slice %0 {offsets = [3, 0], sizes = [1, 8], strides = [1, 1]} : vector<5x8xf32> to vector<1x8xf32>
    %c0_5 = arith.constant 0 : index
    %c3 = arith.constant 3 : index
    %16 = memref.load %arg2[%c0_5, %c3] : memref<2x5xf32, #tpu.memory_space<smem>>
    %17 = vector.broadcast %16 : f32 to vector<1x8xf32>
    %18 = arith.mulf %15, %17 : vector<1x8xf32>
    %19 = arith.addf %14, %18 : vector<1x8xf32>
    %20 = vector.extract_strided_slice %0 {offsets = [4, 0], sizes = [1, 8], strides = [1, 1]} : vector<5x8xf32> to vector<1x8xf32>
    %c0_6 = arith.constant 0 : index
    %c4 = arith.constant 4 : index
    %21 = memref.load %arg2[%c0_6, %c4] : memref<2x5xf32, #tpu.memory_space<smem>>
    %22 = vector.broadcast %21 : f32 to vector<1x8xf32>
    %23 = arith.mulf %20, %22 : vector<1x8xf32>
    %24 = arith.addf %19, %23 : vector<1x8xf32>
    %c0_7 = arith.constant 0 : index
    %25 = memref.load %arg3[%c0_7] : memref<2xf32, #tpu.memory_space<smem>>
    %26 = vector.broadcast %25 : f32 to vector<1x8xf32>
    %27 = arith.addf %24, %26 : vector<1x8xf32>
    %c0_8 = arith.constant 0 : index
    %c0_9 = arith.constant 0 : index
    %28 = vector.load %arg4[%c0_8, %c0_9] : memref<2x8xf32, #tpu.memory_space<vmem>>, vector<1x8xf32>
    tpu.vector_store %arg4[%c0_8, %c0_9], %27 {strides = array<i32>} : memref<2x8xf32, #tpu.memory_space<vmem>>, vector<1x8xf32>,
    %29 = vector.extract_strided_slice %0 {offsets = [0, 0], sizes = [1, 8], strides = [1, 1]} : vector<5x8xf32> to vector<1x8xf32>
    %c1_10 = arith.constant 1 : index
    %c0_11 = arith.constant 0 : index
    %30 = memref.load %arg2[%c1_10, %c0_11] : memref<2x5xf32, #tpu.memory_space<smem>>
    %31 = vector.broadcast %30 : f32 to vector<1x8xf32>
    %32 = arith.mulf %29, %31 : vector<1x8xf32>
    %33 = vector.extract_strided_slice %0 {offsets = [1, 0], sizes = [1, 8], strides = [1, 1]} : vector<5x8xf32> to vector<1x8xf32>
    %c1_12 = arith.constant 1 : index
    %c1_13 = arith.constant 1 : index
    %34 = memref.load %arg2[%c1_12, %c1_13] : memref<2x5xf32, #tpu.memory_space<smem>>
    %35 = vector.broadcast %34 : f32 to vector<1x8xf32>
    %36 = arith.mulf %33, %35 : vector<1x8xf32>
    %37 = arith.addf %32, %36 : vector<1x8xf32>
    %38 = vector.extract_strided_slice %0 {offsets = [2, 0], sizes = [1, 8], strides = [1, 1]} : vector<5x8xf32> to vector<1x8xf32>
    %c1_14 = arith.constant 1 : index
    %c2_15 = arith.constant 2 : index
    %39 = memref.load %arg2[%c1_14, %c2_15] : memref<2x5xf32, #tpu.memory_space<smem>>
    %40 = vector.broadcast %39 : f32 to vector<1x8xf32>
    %41 = arith.mulf %38, %40 : vector<1x8xf32>
    %42 = arith.addf %37, %41 : vector<1x8xf32>
    %43 = vector.extract_strided_slice %0 {offsets = [3, 0], sizes = [1, 8], strides = [1, 1]} : vector<5x8xf32> to vector<1x8xf32>
    %c1_16 = arith.constant 1 : index
    %c3_17 = arith.constant 3 : index
    %44 = memref.load %arg2[%c1_16, %c3_17] : memref<2x5xf32, #tpu.memory_space<smem>>
    %45 = vector.broadcast %44 : f32 to vector<1x8xf32>
    %46 = arith.mulf %43, %45 : vector<1x8xf32>
    %47 = arith.addf %42, %46 : vector<1x8xf32>
    %48 = vector.extract_strided_slice %0 {offsets = [4, 0], sizes = [1, 8], strides = [1, 1]} : vector<5x8xf32> to vector<1x8xf32>
    %c1_18 = arith.constant 1 : index
    %c4_19 = arith.constant 4 : index
    %49 = memref.load %arg2[%c1_18, %c4_19] : memref<2x5xf32, #tpu.memory_space<smem>>
    %50 = vector.broadcast %49 : f32 to vector<1x8xf32>
    %51 = arith.mulf %48, %50 : vector<1x8xf32>
    %52 = arith.addf %47, %51 : vector<1x8xf32>
    %c1_20 = arith.constant 1 : index
    %53 = memref.load %arg3[%c1_20] : memref<2xf32, #tpu.memory_space<smem>>
    %54 = vector.broadcast %53 : f32 to vector<1x8xf32>
    %55 = arith.addf %52, %54 : vector<1x8xf32>
    %c1_21 = arith.constant 1 : index
    %c0_22 = arith.constant 0 : index
    %56 = vector.load %arg4[%c1_21, %c0_22] : memref<2x8xf32, #tpu.memory_space<vmem>>, vector<1x8xf32>
    tpu.vector_store %arg4[%c1_21, %c0_22], %55 {strides = array<i32>} : memref<2x8xf32, #tpu.memory_space<vmem>>, vector<1x8xf32>,
    return
  }
  func.func @transform_0(%arg0: i32) -> (i32, i32) {
    %c0_i32 = arith.constant 0 : i32
    %c0_i32_0 = arith.constant 0 : i32
    return %c0_i32, %arg0 : i32, i32
  }
  func.func @transform_1(%arg0: i32) -> (i32, i32) {
    %c0_i32 = arith.constant 0 : i32
    %c0_i32_0 = arith.constant 0 : i32
    %c0_i32_1 = arith.constant 0 : i32
    return %c0_i32, %c0_i32_0 : i32, i32
  }
  func.func @transform_2(%arg0: i32) -> i32 {
    %c0_i32 = arith.constant 0 : i32
    %c0_i32_0 = arith.constant 0 : i32
    return %c0_i32 : i32
  }
  func.func @transform_3(%arg0: i32) -> (i32, i32) {
    %c0_i32 = arith.constant 0 : i32
    %c0_i32_0 = arith.constant 0 : i32
    return %c0_i32, %arg0 : i32, i32
  }
}

</mosaic_0001>

<bundles_post_ra>
// kernel: tpu_custom_call.1
= control target key start
LH: loop header
LB: loop body
LE: loop exit
PB: predicated region body
PF: predicated region fallthrough
CT: control target
= control target key end

     0   :  { %8 = vsyncpa [#allocation3], 0  ;;  %s278_s0 = inlined_call_operand.hbm [shape: f32[5,8], index: 0, kind: input, shape index: {}]   ;;  %s279_s1 = inlined_call_operand.hbm [shape: f32[2,5], index: 1, kind: input, shape index: {}]   ;;  %s280_s2 = inlined_call_operand.vmem [shape: f32[2], index: 2, kind: input, shape index: {}]   ;;  %s281_s3 = inlined_call_operand.hbm [shape: f32[2,8], index: 3, kind: output, shape index: {}]  }
   0x1   :  { %9 = vsyncpa [#allocation5], 0 }
   0x2   :  { %10 = vsyncpa [#allocation6], 0 }
   0x3   :  { %11 = vsyncpa [#allocation4], 0  ;;  %s17_s14 = sshll.u32 %s278_s0, 4  ;;  %s239_s15 = smov [#allocation2]   ;;  %s18_s14 = int_to_ptr.hbm [resolvable:$true] %s17_s14 }
   0x4   :  { %s19_s16 = sshll.u32 %s239_s15, 4  ;;  %s28_s19 = sshll.u32 %s279_s1, 4  ;;  %s20_s16 = int_to_ptr.vmem [resolvable:$true] %s19_s16  ;;  %s29_s19 = int_to_ptr.hbm [resolvable:$true] %s28_s19 }
   0x5   :  { %22 = dma.hbm_to_vmem [thread:$0]  %s18_s14, 128, %s20_s16, [#allocation3]  }
   0x6   :  { %s240_s20 = smov [#allocation7]   ;;  %s37_s23 = sshll.u32 %s280_s2, 4  ;;  %s38_s23 = int_to_ptr.vmem [resolvable:$true] %s37_s23 }
   0x7   :  { %31 = dma.hbm_to_smem %s29_s19, 32, %s240_s20, [#allocation5]  }
   0x8   :  { %s241_s24 = smov [#allocation8]  }
   0x9   :  { %40 = dma.vmem_to_smem %s38_s23, 16, %s241_s24, [#allocation6]  }
   0xa   :  { %231 = dma.done.wait [#allocation3], 128  }
   0xb   :  { %232 = vsyncadd [#allocation3], 4294967168 }
   0xc   :  { %233 = dma.done.wait [#allocation5], 32  }
   0xd   :  { %234 = vsyncadd [#allocation5], 4294967264 }
   0xe   :  { %235 = dma.done.wait [#allocation6], 16  }
   0xf   :  { %236 = vsyncadd [#allocation6], 4294967280 }
  0x10   :  { %53 = sfence }
  0x11   :  { %s55_s0 = sld [smem:[#allocation7]]  ;;  %v54_v0 = vld [vmem:[#allocation2] sm:$0x1f]  ;;  %vm89_vm0 = vcmask 57344   ;;  %s242_s7 = smov [#allocation9]  }
  0x12   :  { %s145_s1 = sld [smem:[#allocation7 + $0x1]]  ;;  %s131_s8 = sshll.u32 %s242_s7, 4  ;;  %s132_s8 = int_to_ptr.vmem [resolvable:$true] %s131_s8 }
  0x13   :  { %s146_s25 = sld [smem:[#allocation7 + $0x2]]  ;;  %s133_s11 = sshll.u32 %s281_s3, 4  ;;  %s134_s11 = int_to_ptr.hbm [resolvable:$true] %s133_s11 }
  0x14   :  { %s147_s26 = sld [smem:[#allocation7 + $0x3]] }
  0x15   :  { %s148_s27 = sld [smem:[#allocation7 + $0x4]] }
  0x16   :  { %s272_s28 = sld [smem:[#allocation8]] }
  0x17   :  { %v56_v1 = vstv %s55_s0  ;;  %s149_s2 = sld [smem:[#allocation7 + $0x80]] }
  0x18   :  { %v59_v2 = vstv %s145_s1  ;;  %s150_s29 = sld [smem:[#allocation7 + $0x81]]  ;;  %v57_v3 = vmul.f32 %v56_v1, %v54_v0 }
  0x19   :  { %v60_v4 = vmul.f32 %v59_v2, %v54_v0  ;;  %v66_v5 = vstv %s146_s25  ;;  %s151_s30 = sld [smem:[#allocation7 + $0x82]] }
  0x1a   :  { %v67_v6 = vmul.f32 %v66_v5, %v54_v0  ;;  %v73_v7 = vstv %s147_s26  ;;  %s152_s4 = sld [smem:[#allocation7 + $0x83]] }
  0x1b   :  { %v62_v8 = vrot.slane %v60_v4, 1  ;;  %v74_v9 = vmul.f32 %v73_v7, %v54_v0  ;;  %v80_v10 = vstv %s148_s27  ;;  %s153_s5 = sld [smem:[#allocation7 + $0x84]] }
  0x1c   :  { %v69_v11 = vrot.slane %v67_v6, 2  ;;  %v81_v12 = vmul.f32 %v80_v10, %v54_v0  ;;  %s154_s6 = sld [smem:[#allocation8 + $0x1]]  ;;  %v87_v28 = vstv %s272_s28 }
  0x1d   :  { %v64_v13 = vadd.f32 %v62_v8, %v57_v3  ;;  %v76_v14 = vrot.slane %v74_v9, 3  ;;  %v92_v15 = vstv %s149_s2 }
  0x1e   :  { %v83_v16 = vrot.slane %v81_v12, 4  ;;  %v95_v17 = vstv %s150_s29  ;;  %v93_v19 = vmul.f32 %v92_v15, %v54_v0 }
  0x1f   :  { %v71_v18 = vadd.f32 %v69_v11, %v64_v13  ;;  %v96_v20 = vmul.f32 %v95_v17, %v54_v0  ;;  %v102_v21 = vstv %s151_s30 }
  0x20   :  { %v103_v22 = vmul.f32 %v102_v21, %v54_v0  ;;  %v109_v23 = vstv %s152_s4 }
  0x21   :  { %v78_v24 = vadd.f32 %v76_v14, %v71_v18  ;;  %v98_v25 = vrot.slane %v96_v20, 1  ;;  %v110_v26 = vmul.f32 %v109_v23, %v54_v0  ;;  %v116_v27 = vstv %s153_s5 }
  0x22   :  { %v105_v29 = vrot.slane %v103_v22, 2  ;;  %v117_v30 = vmul.f32 %v116_v27, %v54_v0  ;;  %v123_v38 = vstv %s154_s6 }
  0x23   :  { %v85_v31 = vadd.f32 %v83_v16, %v78_v24  ;;  %v100_v32 = vadd.f32 %v98_v25, %v93_v19  ;;  %v112_v33 = vrot.slane %v110_v26, 3 }
  0x24   :  { %v119_v36 = vrot.slane %v117_v30, 4 }
  0x25   :  { %v88_v34 = vadd.f32 %v87_v28, %v85_v31  ;;  %v107_v35 = vadd.f32 %v105_v29, %v100_v32 }
  0x27   :  { %90 = vst.msk [vmem:[#allocation9] sm:$0x1] %vm89_vm0, %v88_v34  ;;  %v114_v37 = vadd.f32 %v112_v33, %v107_v35 }
  0x29   :  { %v121_v39 = vadd.f32 %v119_v36, %v114_v37 }
  0x2b   :  { %v124_v40 = vadd.f32 %v123_v38, %v121_v39 }
  0x2d   :  { %125 = vst.msk [vmem:[#allocation9 + $0x1] sm:$0x1] %vm89_vm0, %v124_v40 }
  0x2e   :  { %136 = dma.vmem_to_hbm [thread:$0]  %s132_s8, 32, %s134_s11, [#allocation4]  }
  0x2f   :  { %237 = dma.done.wait [#allocation4], 32  }
  0x30   :  { %238 = vsyncadd [#allocation4], 4294967264 }
  0x31   :  { %141 = vsyncpa [#allocation3], 1 }
  0x32   :  { %142 = vsyncpa [#allocation4], 1 }
  0x33   :  { %143 = vsyncpa [#allocation5], 1 }
  0x34   :  { %144 = vsyncpa [#allocation6], 1 }

</bundles_post_ra>
